<compile_context>
chip_gen: v7x
topology: tpu7x:2x2x1
jax: 0.10.0
libtpu: 0.0.40
codegen_flags: <defaults>
</compile_context>

<pallas_src>
from functools import partial

import numpy as np

import jax
import jax.numpy as jnp
from jax import lax
from jax.experimental import pallas as pl
from jax.experimental.pallas import tpu as pltpu


_TARGET_TILE_BYTES = 2 * 1024 * 1024        # ~85% of HBM roofline per measured sweep
_V5E_DEFAULT_SCOPED_VMEM = 16 * 1024 * 1024  # smallest default scoped-VMEM budget
_MAX_BATCH_BLOCK = 32                        # bounds in-kernel unroll & window scratch


# --------------------------------------------------------------------------
# pe table construction (matches the PyTorch __init__, even dim assumed)
# --------------------------------------------------------------------------
def make_positional_encoding_1d(dim: int, len_max: int, dtype=jnp.float32):
    assert dim % 2 == 0, "PositionalEncoding1D requires an even dim"
    div = jnp.exp(
        -jnp.arange(0.0, dim, 2, dtype=jnp.float32) / dim
        * jnp.log(jnp.float32(10000.0))
    )[:, None]                                            # (dim//2, 1)
    l_pos = jnp.arange(0.0, len_max, dtype=jnp.float32)   # (len_max,)
    arg = l_pos[None, :] * div                            # (dim//2, len_max)
    pe = jnp.zeros((dim, len_max), dtype=jnp.float32)
    pe = pe.at[0::2, :].set(jnp.sin(arg))
    pe = pe.at[1::2, :].set(jnp.cos(arg))
    return pe.astype(dtype)


# --------------------------------------------------------------------------
# Tiling helpers
# --------------------------------------------------------------------------
def _flat_tiling(batch, flat, itemsize, target_bytes):
    """Block dims (br, tc) for an elementwise add over a flattened (batch, flat)
    array.  Obeys Mosaic's block-shape rule: br == batch or br % 8 == 0,
    tc == flat or tc % 128 == 0.  Tiles target ~target_bytes each."""
    if batch * flat * itemsize <= target_bytes:
        return batch, flat                                  # single block
    if flat >= 128:
        if batch <= 8 or batch * 128 * itemsize <= target_bytes:
            br = batch                                       # full rows
        else:
            br = max(8, min((batch // 8) * 8,
                            max(8, (target_bytes // (128 * itemsize)) // 8 * 8)))
        tc = max(128, (target_bytes // (br * itemsize)) // 128 * 128)
        if tc >= flat:
            tc = flat
        return br, tc
    # flat < 128: lane dim cannot be tiled; tile rows only.
    if batch <= 8:
        return batch, flat
    br = max(8, min((batch // 8) * 8,
                    max(8, (target_bytes // (flat * itemsize)) // 8 * 8)))
    return br, flat


def _pick_batch_block(batch, per_batch_bytes,
                      target_bytes=_TARGET_TILE_BYTES, cap=_MAX_BATCH_BLOCK):
    """Batches per grid step for the varstart path (no divisor constraint --
    the ragged tail is handled with a cdiv grid + clamped index)."""
    bt = target_bytes // max(per_batch_bytes, 1)
    return int(max(1, min(batch, cap, bt)))


def _compiler_params(dim_sems, vmem_estimate_bytes):
    kwargs = {"dimension_semantics": dim_sems}
    if vmem_estimate_bytes > _V5E_DEFAULT_SCOPED_VMEM:
        # Raise the scoped-VMEM limit only when the tiling actually needs it;
        # keep well under v7x's 64 MiB physical VMEM.
        kwargs["vmem_limit_bytes"] = int(min(vmem_estimate_bytes, 60 * 1024 * 1024))
    return pltpu.CompilerParams(**kwargs)


# --------------------------------------------------------------------------
# Kernels
# --------------------------------------------------------------------------
def _pe_add_flat_kernel(x_ref, pe_ref, o_ref):
    # x_ref: (br, tc), pe_ref: (1, tc) -- lane-dense broadcast add, pure VPU.
    o_ref[...] = x_ref[...] + pe_ref[...]


def _make_varstart_kernel(bt, batch):
    def kernel(start_ref, x_ref, pe_hbm_ref, o_ref, pe_buf, sems):
        # start_ref : SMEM (B,) int32          (scalar prefetch)
        # x_ref     : VMEM (bt, C, L)
        # pe_hbm_ref: HBM  (C, len_max)        (memory_space=pl.ANY)
        # o_ref     : VMEM (bt, C, L)
        # pe_buf    : VMEM (bt, C, L) scratch  (one window slot per batch)
        # sems      : DMA semaphores (bt,)
        g = pl.program_id(0)
        l_dim = x_ref.shape[-1]
        copies = []
        # Issue every window DMA for this step up front: they overlap each
        # other and Pallas's own x prefetch for the next step, and each scratch
        # slot is written exactly once per step (no WAR slot reuse).
        for i in range(bt):
            b = jnp.minimum(g * bt + i, batch - 1)   # clamp for the ragged tail
            s = start_ref[b]
            cp = pltpu.make_async_copy(
                pe_hbm_ref.at[:, pl.ds(s, l_dim)], pe_buf.at[i], sems.at[i]
            )
            cp.start()
            copies.append(cp)
        for i in range(bt):                          # bt is static -> unrolled
            copies[i].wait()
            o_ref[i] = x_ref[i] + pe_buf[i]
    return kernel


# --------------------------------------------------------------------------
# pallas_call wrappers
# --------------------------------------------------------------------------
@partial(jax.jit, static_argnames=("tile_bytes",))
def _pe_add_equal_start(x, pe, start, tile_bytes=_TARGET_TILE_BYTES):
    """start: scalar int32 -- same offset for every batch."""
    B, C, L = x.shape
    assert pe.dtype == x.dtype
    F = C * L
    len_max = pe.shape[1]
    itemsize = x.dtype.itemsize
    s = jnp.clip(start.astype(jnp.int32), 0, len_max - L)
    pe_win = lax.dynamic_slice_in_dim(pe, s, L, axis=1)     # (C, L)

    x_flat = x.reshape(B, F)
    pe_flat = pe_win.reshape(1, F)
    br, tc = _flat_tiling(B, F, itemsize, tile_bytes)
    grid = (pl.cdiv(B, br), pl.cdiv(F, tc))

    cost = pl.CostEstimate(flops=B * F, transcendentals=0,
                           bytes_accessed=3 * B * F * itemsize)
    vmem_est = 4 * br * tc * itemsize + 2 * tc * itemsize + (1 << 20)

    out = pl.pallas_call(
        _pe_add_flat_kernel,
        out_shape=jax.ShapeDtypeStruct((B, F), x.dtype),
        grid=grid,
        in_specs=[
            pl.BlockSpec((br, tc), lambda i, j: (i, j)),
            pl.BlockSpec((1, tc), lambda i, j: (0, j)),
        ],
        out_specs=pl.BlockSpec((br, tc), lambda i, j: (i, j)),
        compiler_params=_compiler_params(("parallel", "parallel"), vmem_est),
        cost_estimate=cost,
    )(x_flat, pe_flat)
    return out.reshape(B, C, L)


@partial(jax.jit, static_argnames=("block_batches",))
def _pe_add_varstart(x, pe, start, block_batches=None):
    """start: (B,) int32 -- per-batch offsets."""
    B, C, L = x.shape
    assert pe.dtype == x.dtype
    len_max = pe.shape[1]
    itemsize = x.dtype.itemsize
    start = jnp.clip(start.astype(jnp.int32), 0, len_max - L)

    per_batch = C * L * itemsize
    bt = block_batches if block_batches is not None else _pick_batch_block(B, per_batch)
    bt = int(max(1, min(bt, B)))
    grid = (pl.cdiv(B, bt),)

    cost = pl.CostEstimate(flops=B * C * L, transcendentals=0,
                           bytes_accessed=3 * B * C * L * itemsize)
    vmem_est = 5 * bt * per_batch + (1 << 20)   # 4x x-tile (in+out dbl-buf) + windows

    return pl.pallas_call(
        _make_varstart_kernel(bt, B),
        out_shape=jax.ShapeDtypeStruct((B, C, L), x.dtype),
        grid_spec=pltpu.PrefetchScalarGridSpec(
            num_scalar_prefetch=1,
            grid=grid,
            in_specs=[
                pl.BlockSpec((bt, C, L), lambda g, start_ref: (g, 0, 0)),
                pl.BlockSpec(memory_space=pl.ANY),      # pe stays in HBM
            ],
            out_specs=pl.BlockSpec((bt, C, L), lambda g, start_ref: (g, 0, 0)),
            scratch_shapes=[
                pltpu.VMEM((bt, C, L), x.dtype),        # one window slot / batch
                pltpu.SemaphoreType.DMA((bt,)),
            ],
        ),
        compiler_params=_compiler_params(("parallel",), vmem_est),
        cost_estimate=cost,
    )(start, x, pe)


# --------------------------------------------------------------------------
# Module
# --------------------------------------------------------------------------
class PositionalEncoding1D:
    """JAX/Pallas port of the PyTorch module (forward semantics only).

    Note: out-of-range starts are clamped to [0, len_max - L], whereas the
    PyTorch module would error / read past the table.
    """

    def __init__(self, dim: int, len_max: int, dtype=jnp.float32):
        self.dim = dim
        self.len_max = len_max
        self.pe = make_positional_encoding_1d(dim, len_max, dtype)
        self._pe_cache = {jnp.dtype(dtype): self.pe}     # dtype-cast cache

    def _pe_for(self, dtype):
        dt = jnp.dtype(dtype)
        if dt not in self._pe_cache:
            self._pe_cache[dt] = self.pe.astype(dt)
        return self._pe_cache[dt]

    def __call__(self, x, start):
        """
        x: (B, C, L) array, C == dim
        start: python/numpy int or 0-d int array (same offset for every batch),
               or per-batch int array of shape (B,)
        """
        B, C, L = x.shape
        assert C == self.dim
        assert L <= self.len_max
        pe = self._pe_for(x.dtype)

        if isinstance(start, (int, np.integer)):
            return _pe_add_equal_start(x, pe, jnp.asarray(start, jnp.int32))
        start = jnp.asarray(start)
        if start.ndim == 0:
            return _pe_add_equal_start(x, pe, start.astype(jnp.int32))
        return _pe_add_varstart(x, pe, start.astype(jnp.int32).reshape(B))


# --------------------------------------------------------------------------
# Self-test
# --------------------------------------------------------------------------
if __name__ == "__main__":
    B, dim, L, len_max = 2, 32, 16, 64

    key = jax.random.PRNGKey(0)
    x = jax.random.normal(key, (B, dim, L), dtype=jnp.float32)

    module = PositionalEncoding1D(dim, len_max)
    pe = module.pe

    # 1) integer start (same for all batches) -- single lane-dense flat block.
    out_int = jax.block_until_ready(module(x, 3))
    ref_int = x + pe[None, :, 3:3 + L]
    assert bool(jnp.allclose(out_int, ref_int, atol=1e-5, rtol=1e-5))

    # 2) same semantics, tiny forced tile target -> exercises the tiled
    #    flattened (rows x 128-lane cols) path.
    out_tiled = jax.block_until_ready(
        _pe_add_equal_start(x, pe, jnp.asarray(3, jnp.int32), tile_bytes=1024))
    assert bool(jnp.allclose(out_tiled, ref_int, atol=1e-5, rtol=1e-5))

    # 3) per-batch start indices -- scalar-prefetch + batched window DMAs.
    starts = jnp.array([3, 7], dtype=jnp.int32)
    out_vec = jax.block_until_ready(module(x, starts))
    ref_vec = jnp.stack(
        [x[i] + pe[:, int(starts[i]):int(starts[i]) + L] for i in range(B)], axis=0)
    assert bool(jnp.allclose(out_vec, ref_vec, atol=1e-5, rtol=1e-5))

    # 4) per-batch starts with a ragged batch grid (B=5, 2 batches / step).
    B2 = 5
    x5 = jax.random.normal(jax.random.PRNGKey(1), (B2, dim, L), dtype=jnp.float32)
    starts5 = jnp.array([0, 5, 11, 17, 48], dtype=jnp.int32)
    out5 = jax.block_until_ready(_pe_add_varstart(x5, pe, starts5, block_batches=2))
    ref5 = jnp.stack(
        [x5[i] + pe[:, int(starts5[i]):int(starts5[i]) + L] for i in range(B2)], axis=0)
    assert bool(jnp.allclose(out5, ref5, atol=1e-5, rtol=1e-5))

    print("KERNEL_OK")
</pallas_src>

<mosaic_0001>
module attributes {stable_mosaic.version = 11 : i64} {
  func.func @_pe_add_flat_kernel(%arg0: i32, %arg1: i32, %arg2: memref<2x512xf32, #tpu.memory_space<vmem>>, %arg3: memref<1x512xf32, #tpu.memory_space<vmem>>, %arg4: memref<2x512xf32, #tpu.memory_space<vmem>>) attributes {dimension_semantics = [#tpu.dimension_semantics<parallel>, #tpu.dimension_semantics<parallel>], iteration_bounds = array<i64: 1, 1>, scalar_prefetch = 0 : i64, scratch_operands = 0 : i64, tpu.core_type = #tpu.core_type<tc>, window_params = [{transform_indices = @transform_0, window_bounds = array<i64: 2, 512>}, {transform_indices = @transform_1, window_bounds = array<i64: 1, 512>}, {transform_indices = @transform_2, window_bounds = array<i64: 2, 512>}]} {
    %c0 = arith.constant 0 : index
    %c0_0 = arith.constant 0 : index
    %0 = vector.load %arg2[%c0, %c0_0] : memref<2x512xf32, #tpu.memory_space<vmem>>, vector<2x512xf32>
    %c0_1 = arith.constant 0 : index
    %c0_2 = arith.constant 0 : index
    %1 = vector.load %arg3[%c0_1, %c0_2] : memref<1x512xf32, #tpu.memory_space<vmem>>, vector<1x512xf32>
    %2 = vector.broadcast %1 : vector<1x512xf32> to vector<2x512xf32>
    %3 = arith.addf %0, %2 : vector<2x512xf32>
    %c0_3 = arith.constant 0 : index
    %c0_4 = arith.constant 0 : index
    %4 = vector.load %arg4[%c0_3, %c0_4] : memref<2x512xf32, #tpu.memory_space<vmem>>, vector<2x512xf32>
    tpu.vector_store %arg4[%c0_3, %c0_4], %3 {strides = array<i32>} : memref<2x512xf32, #tpu.memory_space<vmem>>, vector<2x512xf32>,
    return
  }
  func.func @transform_0(%arg0: i32, %arg1: i32) -> (i32, i32) {
    %c0_i32 = arith.constant 0 : i32
    return %arg0, %arg1 : i32, i32
  }
  func.func @transform_1(%arg0: i32, %arg1: i32) -> (i32, i32) {
    %c0_i32 = arith.constant 0 : i32
    %c0_i32_0 = arith.constant 0 : i32
    return %c0_i32, %arg1 : i32, i32
  }
  func.func @transform_2(%arg0: i32, %arg1: i32) -> (i32, i32) {
    %c0_i32 = arith.constant 0 : i32
    return %arg0, %arg1 : i32, i32
  }
}

</mosaic_0001>

<bundles_post_ra>
// kernel: _pe_add_equal_start.1
= control target key start
LH: loop header
LB: loop body
LE: loop exit
PB: predicated region body
PF: predicated region fallthrough
CT: control target
= control target key end

     0   :  { %v14_v0 = vlaneseq  ;;  %v55_v1 = vmov 1983009808   ;;  %s80_s1 = inlined_call_operand.vmem [shape: f32[1,512], index: 1, kind: input, shape index: {}]   ;;  %s81_s0 = inlined_call_operand.vmem [shape: f32[2,512], index: 0, kind: input, shape index: {}]   ;;  %s82_s2 = inlined_call_operand.vmem [shape: f32[2,512], index: 2, kind: output, shape index: {}]  }
   0x1   :  { %v33_v2 = vunpack.c.l.s4 %v55_v1  ;;  %v12_v4 = vld [vmem:[%s80_s1] sm:$0xf] }
   0x2   :  { %v15_v3 = vshrl.u32 %v14_v0, 7  ;;  %v11_v19 = vld [vmem:[%s81_s0] sm:$0xff] }
   0x3   :  { %v34_v5 = vunpack.c.0.s8 %v33_v2 }
   0x4   :  { %v16_v6 = vsub.s32 0, %v15_v3  ;;  %v20_v7 = vsub.s32 1, %v15_v3  ;;  %v24_v8 = vsub.s32 2, %v15_v3  ;;  %v28_v9 = vsub.s32 3, %v15_v3 }
   0x5   :  { %v37_v10 = vsub.s32 %v34_v5, %v15_v3 }
   0x6   :  { %v17_v11 = vrot.slane %v12_v4, %v16_v6  ;;  %v21_v12 = vrot.slane %v12_v4, %v20_v7  ;;  %v25_v13 = vrot.slane %v12_v4, %v24_v8  ;;  %v29_v14 = vrot.slane %v12_v4, %v28_v9 }
   0x8   :  { %v30_v15 = vcombine.low %v17_v11, %v21_v12  ;;  %v31_v16 = vcombine.low %v25_v13, %v29_v14 }
   0xa   :  { %v38_v17 = vrot.slane %v30_v15, %v37_v10  ;;  %v45_v18 = vrot.slane %v31_v16, %v37_v10 }
   0xc   :  { %v46_v20 = vcombine.low %v38_v17, %v45_v18 }
   0xe   :  { %v48_v21 = vadd.f32 %v46_v20, %v11_v19 }
  0x10   :  { %49 = vst [vmem:[%s82_s2] sm:$0xff] %v48_v21 }

</bundles_post_ra>
